<compile_context>
chip_gen: v7x
topology: tpu7x:2x2x1
jax: 0.10.0
libtpu: 0.0.40
codegen_flags: <defaults>
</compile_context>

<pallas_src>
import numpy as np
import jax
import jax.numpy as jnp
from jax.experimental import pallas as pl
from jax.experimental.pallas import tpu as pltpu

S_DIM = 16
LN_EPS = 1e-5     # torch.nn.LayerNorm default eps
SM_EPS = 1e-15    # masked_softmax epsilon
VMEM_LIMIT = 32 * 1024 * 1024   # explicit scoped-VMEM limit (safe on v5e/v6e/v7x)


def attn_sim_kernel(a_ref, am_ref, b_ref, bm_ref, p_ref, w_ref, bias_ref, o_ref):
    # Block shapes: a/b (Bt, L, H); masks (Bt, L); p (Bt, 1, H);
    # w (5H, OUT_N); bias (1, OUT_N); out (Bt, OUT_N), OUT_N = 128-padded S_DIM.
    p3 = p_ref[...]                                  # (Bt, 1, H)
    H = p3.shape[-1]
    rescale = np.float32(1.0 / np.sqrt(H))

    def layer_norm(x):
        # elementwise_affine=False -> no scale/shift; biased variance like torch
        mu = jnp.mean(x, axis=-1, keepdims=True)
        var = jnp.mean(jnp.square(x - mu), axis=-1, keepdims=True)
        return (x - mu) * jax.lax.rsqrt(var + np.float32(LN_EPS))

    def masked_attend(x_ref, m_ref):
        xn = layer_norm(x_ref[...])                                    # (Bt, L, H)
        # per-row score against p, scaled; no max-subtraction (as in the reference)
        s = jnp.sum(xn * p3, axis=-1, keepdims=True) * rescale         # (Bt, L, 1)
        e = jnp.exp(s) * m_ref[...][:, :, None]                        # (Bt, L, 1)
        denom = jnp.sum(e, axis=1) + np.float32(SM_EPS)                # (Bt, 1)
        num = jnp.sum(xn * e, axis=1)                                  # (Bt, H)
        return num / denom                                             # (Bt, H)

    a_vec = masked_attend(a_ref, am_ref)             # (Bt, H)
    b_vec = masked_attend(b_ref, bm_ref)             # (Bt, H)
    p2 = jnp.sum(p3, axis=1)                         # (Bt, H)

    # Concat-free projection: feats @ W == sum of five partial (Bt,H)@(H,OUT_N) dots.
    def proj(v, k):
        return jnp.dot(v, w_ref[k * H:(k + 1) * H, :],
                       preferred_element_type=jnp.float32)

    y = (proj(p2, 0) + proj(a_vec, 1) + proj(b_vec, 2)
         + proj(p2 * a_vec, 3) + proj(p2 * b_vec, 4) + bias_ref[...])
    o_ref[...] = y.astype(o_ref.dtype)               # (Bt, OUT_N) lane-dense store


def _choose_block_b(B, La, Lb, H, out_n, vmem_budget_bytes=20 * 1024 * 1024):
    """Batch tile: as large as the budget allows (double-buffered streams +
    resident weights), a multiple of 8, and leaving >=2 grid steps when B >= 16
    so both v7x TensorCores get work. Budget leaves headroom under VMEM_LIMIT."""
    weight_bytes = 2 * (5 * H * out_n + out_n) * 4                   # w + bias, x2 bufs
    per_row = 2 * ((La + Lb) * H + La + Lb + H + out_n) * 4          # a,b,masks,p,out
    bt = (vmem_budget_bytes - weight_bytes) // max(per_row, 1)
    bt = int(max(8, min(512, bt)))
    bt -= bt % 8
    if B >= 16:
        half = -(-B // 2)
        half = (-(-half // 8)) * 8
        bt = min(bt, max(8, half))
    if B <= bt:
        return B
    return bt


def attention_similarity(a, a_mask, b, b_mask, p, w_t, bias, *, block_b=None):
    """a: (B, La, H), a_mask: (B, La), b: (B, Lb, H), b_mask: (B, Lb),
    p: (B, H), w_t: (5H, S_DIM), bias: (S_DIM,) -> (B, S_DIM)"""
    B, La, H = a.shape
    Lb = b.shape[1]
    f32 = jnp.float32

    a = a.astype(f32)
    b = b.astype(f32)
    a_mask2 = a_mask.reshape(B, La).astype(f32)      # lane-dense masks (L on lanes)
    b_mask2 = b_mask.reshape(B, Lb).astype(f32)
    p3 = p.reshape(B, 1, H).astype(f32)

    # Pad the projection width to a full 128-lane row so the output store is an
    # unmasked vst; pad columns are zero and sliced off below.
    out_n = ((S_DIM + 127) // 128) * 128
    w_pad = jnp.zeros((5 * H, out_n), f32).at[:, :S_DIM].set(w_t.astype(f32))
    bias_pad = jnp.zeros((1, out_n), f32).at[:, :S_DIM].set(
        bias.astype(f32).reshape(1, S_DIM))

    Bt = block_b if block_b is not None else _choose_block_b(B, La, Lb, H, out_n)
    grid_b = -(-B // Bt)
    Bp = grid_b * Bt
    if Bp != B:                                      # pad batch with zero rows
        pb = Bp - B
        a = jnp.pad(a, ((0, pb), (0, 0), (0, 0)))
        b = jnp.pad(b, ((0, pb), (0, 0), (0, 0)))
        a_mask2 = jnp.pad(a_mask2, ((0, pb), (0, 0)))
        b_mask2 = jnp.pad(b_mask2, ((0, pb), (0, 0)))
        p3 = jnp.pad(p3, ((0, pb), (0, 0), (0, 0)))

    out = pl.pallas_call(
        attn_sim_kernel,
        out_shape=jax.ShapeDtypeStruct((Bp, out_n), jnp.float32),
        grid=(grid_b,),
        in_specs=[
            pl.BlockSpec((Bt, La, H), lambda i: (i, 0, 0)),
            pl.BlockSpec((Bt, La), lambda i: (i, 0)),
            pl.BlockSpec((Bt, Lb, H), lambda i: (i, 0, 0)),
            pl.BlockSpec((Bt, Lb), lambda i: (i, 0)),
            pl.BlockSpec((Bt, 1, H), lambda i: (i, 0, 0)),
            # weight / bias: constant block index -> pipeliner keeps them resident
            pl.BlockSpec((5 * H, out_n), lambda i: (0, 0)),
            pl.BlockSpec((1, out_n), lambda i: (0, 0)),
        ],
        out_specs=pl.BlockSpec((Bt, out_n), lambda i: (i, 0)),
        compiler_params=pltpu.CompilerParams(
            dimension_semantics=("parallel",),
            vmem_limit_bytes=VMEM_LIMIT),
    )(a, a_mask2, b, b_mask2, p3, w_pad, bias_pad)
    return out[:B, :S_DIM]


def reference_jax(a, a_mask, b, b_mask, p, w_t, bias):
    """Pure-JAX reference mirroring the PyTorch forward (eval mode)."""
    H = a.shape[-1]
    rescale = 1.0 / np.sqrt(H)

    def ln(x):
        mu = jnp.mean(x, axis=-1, keepdims=True)
        var = jnp.mean((x - mu) ** 2, axis=-1, keepdims=True)
        return (x - mu) / jnp.sqrt(var + LN_EPS)

    def masked_softmax(vec, mask):
        exps = jnp.exp(vec)
        masked_exps = exps * mask
        masked_sums = masked_exps.sum(1, keepdims=True) + SM_EPS
        return masked_exps / masked_sums

    a_n = ln(a)
    b_n = ln(b)
    a_s = jnp.einsum('blh,bh->bl', a_n, p) * rescale
    b_s = jnp.einsum('blh,bh->bl', b_n, p) * rescale
    a_attn = masked_softmax(a_s, a_mask)
    b_attn = masked_softmax(b_s, b_mask)
    a_v = (a_n * a_attn[:, :, None]).sum(1)
    b_v = (b_n * b_attn[:, :, None]).sum(1)
    feats = jnp.concatenate([p, a_v, b_v, p * a_v, p * b_v], axis=1)
    return feats @ w_t + bias[None, :]


if __name__ == "__main__":
    B, L, H = 2, 8, 32          # batch, seq len, hidden_dim
    key = jax.random.PRNGKey(0)
    k_a, k_b, k_p, k_w, k_bias = jax.random.split(key, 5)

    a = jax.random.normal(k_a, (B, L, H), dtype=jnp.float32)
    b = jax.random.normal(k_b, (B, L, H), dtype=jnp.float32)
    p = jax.random.normal(k_p, (B, H), dtype=jnp.float32)

    # masks: 1.0 for valid positions, 0.0 for padding
    lengths = jnp.array([6, 4], dtype=jnp.int32)
    pos = jnp.arange(L)[None, :]
    a_mask = (pos < lengths[:, None]).astype(jnp.float32)
    b_mask = (pos < (lengths[::-1])[:, None]).astype(jnp.float32)

    # ffnn: Linear(5H -> S_DIM), kaiming_normal weight, default-style bias;
    # stored transposed as (5H, S_DIM) for x @ W.
    fan_in = 5 * H
    w_t = (jax.random.normal(k_w, (fan_in, S_DIM), dtype=jnp.float32)
           * np.sqrt(2.0 / fan_in))
    bias = (jax.random.uniform(k_bias, (S_DIM,), dtype=jnp.float32) - 0.5) \
        * (2.0 / np.sqrt(fan_in))

    y_ref = reference_jax(a, a_mask, b, b_mask, p, w_t, bias)

    # Default batch tile (Bt == B here, single grid step).
    y = attention_similarity(a, a_mask, b, b_mask, p, w_t, bias)
    jax.block_until_ready(y)
    np.testing.assert_allclose(np.asarray(y), np.asarray(y_ref),
                               rtol=1e-4, atol=1e-4)

    # Also exercise the batch-padding path (Bt=8 > B, zero-padded batch rows).
    y_pad = attention_similarity(a, a_mask, b, b_mask, p, w_t, bias, block_b=8)
    jax.block_until_ready(y_pad)
    np.testing.assert_allclose(np.asarray(y_pad), np.asarray(y_ref),
                               rtol=1e-4, atol=1e-4)

    print("KERNEL_OK")
</pallas_src>

<mosaic_0001>
module attributes {stable_mosaic.version = 11 : i64} {
  func.func @attn_sim_kernel(%arg0: i32, %arg1: memref<2x8x32xf32, #tpu.memory_space<vmem>>, %arg2: memref<2x8xf32, #tpu.memory_space<vmem>>, %arg3: memref<2x8x32xf32, #tpu.memory_space<vmem>>, %arg4: memref<2x8xf32, #tpu.memory_space<vmem>>, %arg5: memref<2x1x32xf32, #tpu.memory_space<vmem>>, %arg6: memref<160x128xf32, #tpu.memory_space<vmem>>, %arg7: memref<1x128xf32, #tpu.memory_space<vmem>>, %arg8: memref<2x128xf32, #tpu.memory_space<vmem>>) attributes {dimension_semantics = [#tpu.dimension_semantics<parallel>], iteration_bounds = array<i64: 1>, scalar_prefetch = 0 : i64, scratch_operands = 0 : i64, tpu.core_type = #tpu.core_type<tc>, window_params = [{transform_indices = @transform_0, window_bounds = array<i64: 2, 8, 32>}, {transform_indices = @transform_1, window_bounds = array<i64: 2, 8>}, {transform_indices = @transform_2, window_bounds = array<i64: 2, 8, 32>}, {transform_indices = @transform_3, window_bounds = array<i64: 2, 8>}, {transform_indices = @transform_4, window_bounds = array<i64: 2, 1, 32>}, {pipeline_mode = #tpu.pipeline_mode<synchronous>, transform_indices = @transform_5, window_bounds = array<i64: 160, 128>}, {pipeline_mode = #tpu.pipeline_mode<synchronous>, transform_indices = @transform_6, window_bounds = array<i64: 1, 128>}, {transform_indices = @transform_7, window_bounds = array<i64: 2, 128>}]} {
    %c0 = arith.constant 0 : index
    %c0_0 = arith.constant 0 : index
    %c0_1 = arith.constant 0 : index
    %0 = vector.load %arg5[%c0, %c0_0, %c0_1] : memref<2x1x32xf32, #tpu.memory_space<vmem>>, vector<2x1x32xf32>
    %c0_2 = arith.constant 0 : index
    %c0_3 = arith.constant 0 : index
    %c0_4 = arith.constant 0 : index
    %1 = vector.load %arg1[%c0_2, %c0_3, %c0_4] : memref<2x8x32xf32, #tpu.memory_space<vmem>>, vector<2x8x32xf32>
    %cst = arith.constant dense<0.000000e+00> : vector<2x8xf32>
    %2 = vector.multi_reduction <add>, %1, %cst [2] : vector<2x8x32xf32> to vector<2x8xf32>
    %3 = vector.shape_cast %2 : vector<2x8xf32> to vector<2x8x1xf32>
    %cst_5 = arith.constant 3.200000e+01 : f32
    %4 = vector.broadcast %cst_5 : f32 to vector<2x8x1xf32>
    %5 = arith.divf %3, %4 : vector<2x8x1xf32>
    %6 = vector.broadcast %5 : vector<2x8x1xf32> to vector<2x8x32xf32>
    %7 = arith.subf %1, %6 : vector<2x8x32xf32>
    %8 = arith.mulf %7, %7 : vector<2x8x32xf32>
    %cst_6 = arith.constant dense<0.000000e+00> : vector<2x8xf32>
    %9 = vector.multi_reduction <add>, %8, %cst_6 [2] : vector<2x8x32xf32> to vector<2x8xf32>
    %10 = vector.shape_cast %9 : vector<2x8xf32> to vector<2x8x1xf32>
    %cst_7 = arith.constant 3.200000e+01 : f32
    %11 = vector.broadcast %cst_7 : f32 to vector<2x8x1xf32>
    %12 = arith.divf %10, %11 : vector<2x8x1xf32>
    %13 = vector.broadcast %5 : vector<2x8x1xf32> to vector<2x8x32xf32>
    %14 = arith.subf %1, %13 : vector<2x8x32xf32>
    %cst_8 = arith.constant 9.99999974E-6 : f32
    %15 = vector.broadcast %cst_8 : f32 to vector<2x8x1xf32>
    %16 = arith.addf %12, %15 : vector<2x8x1xf32>
    %17 = math.rsqrt %16 : vector<2x8x1xf32>
    %18 = vector.broadcast %17 : vector<2x8x1xf32> to vector<2x8x32xf32>
    %19 = arith.mulf %14, %18 : vector<2x8x32xf32>
    %20 = vector.broadcast %0 : vector<2x1x32xf32> to vector<2x8x32xf32>
    %21 = arith.mulf %19, %20 : vector<2x8x32xf32>
    %cst_9 = arith.constant dense<0.000000e+00> : vector<2x8xf32>
    %22 = vector.multi_reduction <add>, %21, %cst_9 [2] : vector<2x8x32xf32> to vector<2x8xf32>
    %23 = vector.shape_cast %22 : vector<2x8xf32> to vector<2x8x1xf32>
    %cst_10 = arith.constant 0.176776692 : f32
    %24 = vector.broadcast %cst_10 : f32 to vector<2x8x1xf32>
    %25 = arith.mulf %23, %24 : vector<2x8x1xf32>
    %26 = math.exp %25 : vector<2x8x1xf32>
    %c0_11 = arith.constant 0 : index
    %c0_12 = arith.constant 0 : index
    %27 = vector.load %arg2[%c0_11, %c0_12] : memref<2x8xf32, #tpu.memory_space<vmem>>, vector<2x8xf32>
    %28 = vector.shape_cast %27 : vector<2x8xf32> to vector<2x8x1xf32>
    %29 = arith.mulf %26, %28 : vector<2x8x1xf32>
    %cst_13 = arith.constant dense<0.000000e+00> : vector<2x1xf32>
    %30 = vector.multi_reduction <add>, %29, %cst_13 [1] : vector<2x8x1xf32> to vector<2x1xf32>
    %cst_14 = arith.constant 1.000000e-15 : f32
    %31 = vector.broadcast %cst_14 : f32 to vector<2x1xf32>
    %32 = arith.addf %30, %31 : vector<2x1xf32>
    %33 = vector.broadcast %29 : vector<2x8x1xf32> to vector<2x8x32xf32>
    %34 = arith.mulf %19, %33 : vector<2x8x32xf32>
    %cst_15 = arith.constant dense<0.000000e+00> : vector<2x32xf32>
    %35 = vector.multi_reduction <add>, %34, %cst_15 [1] : vector<2x8x32xf32> to vector<2x32xf32>
    %36 = vector.broadcast %32 : vector<2x1xf32> to vector<2x32xf32>
    %37 = arith.divf %35, %36 : vector<2x32xf32>
    %c0_16 = arith.constant 0 : index
    %c0_17 = arith.constant 0 : index
    %c0_18 = arith.constant 0 : index
    %38 = vector.load %arg3[%c0_16, %c0_17, %c0_18] : memref<2x8x32xf32, #tpu.memory_space<vmem>>, vector<2x8x32xf32>
    %cst_19 = arith.constant dense<0.000000e+00> : vector<2x8xf32>
    %39 = vector.multi_reduction <add>, %38, %cst_19 [2] : vector<2x8x32xf32> to vector<2x8xf32>
    %40 = vector.shape_cast %39 : vector<2x8xf32> to vector<2x8x1xf32>
    %cst_20 = arith.constant 3.200000e+01 : f32
    %41 = vector.broadcast %cst_20 : f32 to vector<2x8x1xf32>
    %42 = arith.divf %40, %41 : vector<2x8x1xf32>
    %43 = vector.broadcast %42 : vector<2x8x1xf32> to vector<2x8x32xf32>
    %44 = arith.subf %38, %43 : vector<2x8x32xf32>
    %45 = arith.mulf %44, %44 : vector<2x8x32xf32>
    %cst_21 = arith.constant dense<0.000000e+00> : vector<2x8xf32>
    %46 = vector.multi_reduction <add>, %45, %cst_21 [2] : vector<2x8x32xf32> to vector<2x8xf32>
    %47 = vector.shape_cast %46 : vector<2x8xf32> to vector<2x8x1xf32>
    %cst_22 = arith.constant 3.200000e+01 : f32
    %48 = vector.broadcast %cst_22 : f32 to vector<2x8x1xf32>
    %49 = arith.divf %47, %48 : vector<2x8x1xf32>
    %50 = vector.broadcast %42 : vector<2x8x1xf32> to vector<2x8x32xf32>
    %51 = arith.subf %38, %50 : vector<2x8x32xf32>
    %cst_23 = arith.constant 9.99999974E-6 : f32
    %52 = vector.broadcast %cst_23 : f32 to vector<2x8x1xf32>
    %53 = arith.addf %49, %52 : vector<2x8x1xf32>
    %54 = math.rsqrt %53 : vector<2x8x1xf32>
    %55 = vector.broadcast %54 : vector<2x8x1xf32> to vector<2x8x32xf32>
    %56 = arith.mulf %51, %55 : vector<2x8x32xf32>
    %57 = vector.broadcast %0 : vector<2x1x32xf32> to vector<2x8x32xf32>
    %58 = arith.mulf %56, %57 : vector<2x8x32xf32>
    %cst_24 = arith.constant dense<0.000000e+00> : vector<2x8xf32>
    %59 = vector.multi_reduction <add>, %58, %cst_24 [2] : vector<2x8x32xf32> to vector<2x8xf32>
    %60 = vector.shape_cast %59 : vector<2x8xf32> to vector<2x8x1xf32>
    %cst_25 = arith.constant 0.176776692 : f32
    %61 = vector.broadcast %cst_25 : f32 to vector<2x8x1xf32>
    %62 = arith.mulf %60, %61 : vector<2x8x1xf32>
    %63 = math.exp %62 : vector<2x8x1xf32>
    %c0_26 = arith.constant 0 : index
    %c0_27 = arith.constant 0 : index
    %64 = vector.load %arg4[%c0_26, %c0_27] : memref<2x8xf32, #tpu.memory_space<vmem>>, vector<2x8xf32>
    %65 = vector.shape_cast %64 : vector<2x8xf32> to vector<2x8x1xf32>
    %66 = arith.mulf %63, %65 : vector<2x8x1xf32>
    %cst_28 = arith.constant dense<0.000000e+00> : vector<2x1xf32>
    %67 = vector.multi_reduction <add>, %66, %cst_28 [1] : vector<2x8x1xf32> to vector<2x1xf32>
    %cst_29 = arith.constant 1.000000e-15 : f32
    %68 = vector.broadcast %cst_29 : f32 to vector<2x1xf32>
    %69 = arith.addf %67, %68 : vector<2x1xf32>
    %70 = vector.broadcast %66 : vector<2x8x1xf32> to vector<2x8x32xf32>
    %71 = arith.mulf %56, %70 : vector<2x8x32xf32>
    %cst_30 = arith.constant dense<0.000000e+00> : vector<2x32xf32>
    %72 = vector.multi_reduction <add>, %71, %cst_30 [1] : vector<2x8x32xf32> to vector<2x32xf32>
    %73 = vector.broadcast %69 : vector<2x1xf32> to vector<2x32xf32>
    %74 = arith.divf %72, %73 : vector<2x32xf32>
    %cst_31 = arith.constant dense<0.000000e+00> : vector<2x32xf32>
    %75 = vector.multi_reduction <add>, %0, %cst_31 [1] : vector<2x1x32xf32> to vector<2x32xf32>
    %c0_32 = arith.constant 0 : index
    %c0_33 = arith.constant 0 : index
    %76 = vector.load %arg6[%c0_32, %c0_33] : memref<160x128xf32, #tpu.memory_space<vmem>>, vector<32x128xf32>
    %cst_34 = arith.constant dense<0.000000e+00> : vector<2x128xf32>
    %77 = tpu.matmul %75, %76, %cst_34 {dimension_numbers = #tpu.dot_dimension_numbers<[1], [0], [0], [1], [0, 0, 1, 1], [], []>} : vector<2x32xf32>, vector<32x128xf32>, vector<2x128xf32> -> vector<2x128xf32>
    %c32 = arith.constant 32 : index
    %c0_35 = arith.constant 0 : index
    %78 = vector.load %arg6[%c32, %c0_35] : memref<160x128xf32, #tpu.memory_space<vmem>>, vector<32x128xf32>
    %cst_36 = arith.constant dense<0.000000e+00> : vector<2x128xf32>
    %79 = tpu.matmul %37, %78, %cst_36 {dimension_numbers = #tpu.dot_dimension_numbers<[1], [0], [0], [1], [0, 0, 1, 1], [], []>} : vector<2x32xf32>, vector<32x128xf32>, vector<2x128xf32> -> vector<2x128xf32>
    %80 = arith.addf %77, %79 : vector<2x128xf32>
    %c64 = arith.constant 64 : index
    %c0_37 = arith.constant 0 : index
    %81 = vector.load %arg6[%c64, %c0_37] : memref<160x128xf32, #tpu.memory_space<vmem>>, vector<32x128xf32>
    %cst_38 = arith.constant dense<0.000000e+00> : vector<2x128xf32>
    %82 = tpu.matmul %74, %81, %cst_38 {dimension_numbers = #tpu.dot_dimension_numbers<[1], [0], [0], [1], [0, 0, 1, 1], [], []>} : vector<2x32xf32>, vector<32x128xf32>, vector<2x128xf32> -> vector<2x128xf32>
    %83 = arith.addf %80, %82 : vector<2x128xf32>
    %84 = arith.mulf %75, %37 : vector<2x32xf32>
    %c96 = arith.constant 96 : index
    %c0_39 = arith.constant 0 : index
    %85 = vector.load %arg6[%c96, %c0_39] : memref<160x128xf32, #tpu.memory_space<vmem>>, vector<32x128xf32>
    %cst_40 = arith.constant dense<0.000000e+00> : vector<2x128xf32>
    %86 = tpu.matmul %84, %85, %cst_40 {dimension_numbers = #tpu.dot_dimension_numbers<[1], [0], [0], [1], [0, 0, 1, 1], [], []>} : vector<2x32xf32>, vector<32x128xf32>, vector<2x128xf32> -> vector<2x128xf32>
    %87 = arith.addf %83, %86 : vector<2x128xf32>
    %88 = arith.mulf %75, %74 : vector<2x32xf32>
    %c128 = arith.constant 128 : index
    %c0_41 = arith.constant 0 : index
    %89 = vector.load %arg6[%c128, %c0_41] : memref<160x128xf32, #tpu.memory_space<vmem>>, vector<32x128xf32>
    %cst_42 = arith.constant dense<0.000000e+00> : vector<2x128xf32>
    %90 = tpu.matmul %88, %89, %cst_42 {dimension_numbers = #tpu.dot_dimension_numbers<[1], [0], [0], [1], [0, 0, 1, 1], [], []>} : vector<2x32xf32>, vector<32x128xf32>, vector<2x128xf32> -> vector<2x128xf32>
    %91 = arith.addf %87, %90 : vector<2x128xf32>
    %c0_43 = arith.constant 0 : index
    %c0_44 = arith.constant 0 : index
    %92 = vector.load %arg7[%c0_43, %c0_44] : memref<1x128xf32, #tpu.memory_space<vmem>>, vector<1x128xf32>
    %93 = vector.broadcast %92 : vector<1x128xf32> to vector<2x128xf32>
    %94 = arith.addf %91, %93 : vector<2x128xf32>
    %c0_45 = arith.constant 0 : index
    %c0_46 = arith.constant 0 : index
    %95 = vector.load %arg8[%c0_45, %c0_46] : memref<2x128xf32, #tpu.memory_space<vmem>>, vector<2x128xf32>
    tpu.vector_store %arg8[%c0_45, %c0_46], %94 {strides = array<i32>} : memref<2x128xf32, #tpu.memory_space<vmem>>, vector<2x128xf32>,
    return
  }
  func.func @transform_0(%arg0: i32) -> (i32, i32, i32) {
    %c0_i32 = arith.constant 0 : i32
    %c0_i32_0 = arith.constant 0 : i32
    %c0_i32_1 = arith.constant 0 : i32
    return %arg0, %c0_i32, %c0_i32_0 : i32, i32, i32
  }
  func.func @transform_1(%arg0: i32) -> (i32, i32) {
    %c0_i32 = arith.constant 0 : i32
    %c0_i32_0 = arith.constant 0 : i32
    return %arg0, %c0_i32 : i32, i32
  }
  func.func @transform_2(%arg0: i32) -> (i32, i32, i32) {
    %c0_i32 = arith.constant 0 : i32
    %c0_i32_0 = arith.constant 0 : i32
    %c0_i32_1 = arith.constant 0 : i32
    return %arg0, %c0_i32, %c0_i32_0 : i32, i32, i32
  }
  func.func @transform_3(%arg0: i32) -> (i32, i32) {
    %c0_i32 = arith.constant 0 : i32
    %c0_i32_0 = arith.constant 0 : i32
    return %arg0, %c0_i32 : i32, i32
  }
  func.func @transform_4(%arg0: i32) -> (i32, i32, i32) {
    %c0_i32 = arith.constant 0 : i32
    %c0_i32_0 = arith.constant 0 : i32
    %c0_i32_1 = arith.constant 0 : i32
    return %arg0, %c0_i32, %c0_i32_0 : i32, i32, i32
  }
  func.func @transform_5(%arg0: i32) -> (i32, i32) {
    %c0_i32 = arith.constant 0 : i32
    %c0_i32_0 = arith.constant 0 : i32
    %c0_i32_1 = arith.constant 0 : i32
    return %c0_i32, %c0_i32_0 : i32, i32
  }
  func.func @transform_6(%arg0: i32) -> (i32, i32) {
    %c0_i32 = arith.constant 0 : i32
    %c0_i32_0 = arith.constant 0 : i32
    %c0_i32_1 = arith.constant 0 : i32
    return %c0_i32, %c0_i32_0 : i32, i32
  }
  func.func @transform_7(%arg0: i32) -> (i32, i32) {
    %c0_i32 = arith.constant 0 : i32
    %c0_i32_0 = arith.constant 0 : i32
    return %arg0, %c0_i32 : i32, i32
  }
}

</mosaic_0001>

<bundles_post_ra>
// kernel: tpu_custom_call.1
= control target key start
LH: loop header
LB: loop body
LE: loop exit
PB: predicated region body
PF: predicated region fallthrough
CT: control target
= control target key end

     0   :  { %12 = vsyncpa [#allocation3], 0  ;;  %s1208_s0 = inlined_call_operand.hbm [shape: f32[2,8,32], index: 0, kind: input, shape index: {}]   ;;  %s1209_s1 = inlined_call_operand.vmem [shape: f32[2,8], index: 1, kind: input, shape index: {}]   ;;  %s1210_s2 = inlined_call_operand.hbm [shape: f32[2,8,32], index: 2, kind: input, shape index: {}]   ;;  %s1211_s3 = inlined_call_operand.vmem [shape: f32[2,8], index: 3, kind: input, shape index: {}]   ;;  %s1212_s4 = inlined_call_operand.vmem [shape: f32[2,1,32], index: 4, kind: input, shape index: {}]   ;;  %s1213_s5 = inlined_call_operand.hbm [shape: f32[160,128], index: 5, kind: input, shape index: {}]   ;;  %s1214_s6 = inlined_call_operand.vmem [shape: f32[1,128], index: 6, kind: input, shape index: {}]   ;;  %s1215_s7 = inlined_call_operand.hbm [shape: f32[2,128], index: 7, kind: output, shape index: {}]  }
   0x1   :  { %13 = vsyncpa [#allocation6], 0 }
   0x2   :  { %14 = vsyncpa [#allocation4], 0  ;;  %s986_s24 = smov [#allocation5]   ;;  %s987_s26 = smov [#allocation2]  }
   0x3   :  { %s34_s25 = sshll.u32 %s986_s24, 4  ;;  %s20_s27 = sshll.u32 %s987_s26, 4  ;;  %s35_s25 = int_to_ptr.vmem [resolvable:$true] %s34_s25  ;;  %s1036_s27 = int_to_ptr.vmem [resolvable:$true] %s20_s27 }
   0x4   :  { %s892_s30 = scalar_lea.hbm %s1210_s2, 256 }
   0x5   :  { %p893_p0 = scmp.ne.s32.totalorder %s1210_s2, %s892_s30  ;;  %p896_p1 = scmp.lt.u32.totalorder %s892_s30, %s1210_s2 }
   0x7   :  { %p898_p2 = pnand %p896_p1, %p893_p0 }
   0x9   :  { %901 = shalt.err (!%p898_p2)
}
   0xa   :  { %s902_s12 = scalar_lea.vmem %s35_s25, 256  ;;  %p907_p4 = scmp.lt.s32.totalorder %s35_s25, %s35_s25 }
   0xb   :  { %p903_p3 = scmp.ne.s32.totalorder %s35_s25, %s902_s12  ;;  %p908_p5 = scmp.lt.s32.totalorder %s902_s12, %s902_s12 }
   0xd   :  { %p909_p6 = por %p908_p5, %p907_p4 }
   0xf   :  { %p910_p7 = pnand %p909_p6, %p903_p3 }
  0x11   :  { %913 = shalt.err (!%p910_p7)
}
  0x12   :  { %s988_s13 = smov 128   ;;  %s989_s14 = smov 8  }
  0x13   :  { %40 = dma.hbm_to_vmem [thread:$0]  %s1210_s2, 256, %s35_s25, [#allocation6], %s988_s13, %s988_s13, %s989_s14  }
  0x14   :  { %s914_s19 = scalar_lea.hbm %s1208_s0, 256 }
  0x15   :  { %p915_p8 = scmp.ne.s32.totalorder %s1208_s0, %s914_s19  ;;  %p918_p9 = scmp.lt.u32.totalorder %s914_s19, %s1208_s0 }
  0x17   :  { %p920_p10 = pnand %p918_p9, %p915_p8 }
  0x19   :  { %923 = shalt.err (!%p920_p10)
}
  0x1a   :  { %s924_s24 = scalar_lea.vmem %s1036_s27, 256  ;;  %p929_p12 = scmp.lt.s32.totalorder %s1036_s27, %s1036_s27 }
  0x1b   :  { %p925_p11 = scmp.ne.s32.totalorder %s1036_s27, %s924_s24  ;;  %p930_p13 = scmp.lt.s32.totalorder %s924_s24, %s924_s24 }
  0x1d   :  { %p931_p0 = por %p930_p13, %p929_p12 }
  0x1f   :  { %p932_p1 = pnand %p931_p0, %p925_p11 }
  0x21   :  { %935 = shalt.err (!%p932_p1)
}
  0x22   :  { %26 = dma.hbm_to_vmem [thread:$0]  %s1208_s0, 256, %s1036_s27, [#allocation3], %s988_s13, %s988_s13, %s989_s14  }
  0x23   :  { %s990_s26 = smov [#allocation7]   ;;  %s936_s8 = scalar_lea.hbm %s1213_s5, 2560 }
  0x24   :  { %s50_s28 = sshll.u32 %s990_s26, 4  ;;  %p937_p2 = scmp.ne.s32.totalorder %s1213_s5, %s936_s8  ;;  %s51_s28 = int_to_ptr.vmem [resolvable:$true] %s50_s28 }
  0x25   :  { %p940_p3 = scmp.lt.u32.totalorder %s936_s8, %s1213_s5 }
  0x27   :  { %p942_p4 = pnand %p940_p3, %p937_p2 }
  0x29   :  { %945 = shalt.err (!%p942_p4)
}
  0x2a   :  { %s946_s15 = scalar_lea.vmem %s51_s28, 2560  ;;  %p951_p6 = scmp.lt.s32.totalorder %s51_s28, %s51_s28 }
  0x2b   :  { %p947_p5 = scmp.ne.s32.totalorder %s51_s28, %s946_s15  ;;  %p952_p7 = scmp.lt.s32.totalorder %s946_s15, %s946_s15 }
  0x2d   :  { %p953_p8 = por %p952_p7, %p951_p6 }
  0x2f   :  { %p954_p9 = pnand %p953_p8, %p947_p5 }
  0x31   :  { %957 = shalt.err (!%p954_p9)
}
  0x32   :  { %56 = dma.hbm_to_vmem [thread:$0]  %s1213_s5, 2560, %s51_s28, [#allocation6], %s988_s13, %s988_s13, %s989_s14  }
  0x33   :  { %980 = dma.done.wait [#allocation3], 256  }
  0x34   :  { %981 = vsyncadd [#allocation3], 4294967040 }
  0x35   :  { %982 = dma.done.wait [#allocation6], 2816  }
  0x36   :  { %983 = vsyncadd [#allocation6], 4294964480  ;;  %vm72_vm0 = vcmask 261120   ;;  %v70_v0 = vld [vmem:[#allocation2] sm:$0xff]  ;;  %v177_v1 = vld [vmem:[#allocation5] sm:$0xff]  ;;  %v102_v30 = vlaneseq  ;;  %vm993_vm1 = vmmov 0  }
  0x37   :  { %v71_v2 = vld [vmem:[#allocation2 + $0x8] sm:$0xff]  ;;  %v73_v3 = vsel %vm72_vm0, %v70_v0, 0.0  ;;  %v179_v4 = vsel %vm72_vm0, %v177_v1, 0.0  ;;  %v178_v5 = vld [vmem:[#allocation5 + $0x8] sm:$0xff]  ;;  %v1106_v40 = vld [vmem:[%s1212_s4] sm:$0x1] }
  0x38   :  { %74 = vadd.xlane.f32.xlu0 %v73_v3  ;;  %180 = vadd.xlane.f32.xlu1 %v179_v4  ;;  %v76_v6 = vsel %vm72_vm0, %v71_v2, 0.0  ;;  %v182_v7 = vsel %vm72_vm0, %v178_v5, 0.0  ;;  %v1100_v36 = vshrl.u32 %v102_v30, 7  ;;  %v1112_v43 = vld [vmem:[%s1212_s4 + $0x1] sm:$0x1]  ;;  %v530_v30 = vld [vmem:[#allocation7 + $0x78] sm:$0xff] }
  0x39   :  { %v126_v57 = vld [vmem:[%s1209_s1] sm:$0x3]  ;;  %vm282_vm2 = vcmask 1041409   ;;  %s995_s20 = smov [#allocation8]  }
  0x3a   :  { %v104_v39 = vsub.s32 0, %v1100_v36  ;;  %v136_v56 = vsub.s32 1, %v1100_v36  ;;  %v219_v59 = vld [vmem:[%s1211_s3] sm:$0x3]  ;;  %s732_s21 = sshll.u32 %s995_s20, 4  ;;  %s733_s21 = int_to_ptr.vmem [resolvable:$true] %s732_s21 }
  0x3b   :  { %v272_v4 = vld [vmem:[#allocation7] sm:$0xff]  ;;  %s958_s22 = scalar_lea.vmem %s733_s21, 32  ;;  %p963_p11 = scmp.lt.s32.totalorder %s733_s21, %s733_s21 }
  0x3c   :  { %77 = vadd.xlane.f32.xlu0 %v76_v6  ;;  %183 = vadd.xlane.f32.xlu1 %v182_v7  ;;  %v105_v41 = vrot.slane %v1106_v40, %v104_v39  ;;  %v109_v46 = vrot.slane %v1112_v43, %v104_v39  ;;  %v137_v58 = vrot.slane %v126_v57, %v136_v56  ;;  %v276_v6 = vld [vmem:[#allocation7 + $0x20] sm:$0xff]  ;;  %v992_v7 = vmov 0.0|0.0   ;;  %p959_p10 = scmp.ne.s32.totalorder %s733_s21, %s958_s22  ;;  %p964_p12 = scmp.lt.s32.totalorder %s958_s22, %s958_s22 }
  0x3d   :  { %v223_v60 = vrot.slane %v219_v59, %v104_v39  ;;  %v130_v61 = vrot.slane %v126_v57, %v104_v39  ;;  %834 = vmatprep.subr.bf16.mxu1 %v992_v7  ;;  %828 = vmatprep.subr.bf16.mxu0 %v992_v7 }
  0x3e   :  { %p965_p13 = por %p964_p12, %p963_p11 }
  0x40   :  { %p966_p0 = pnand %p965_p13, %p959_p10 }
  0xc5   :  { %v75_v8 = vpop.xlane.xlu0 %74  ;;  %v181_v9 = vpop.xlane.xlu1 %180 }
  0xc6   :  { %v80_v10 = vmul.f32 0.03125, %v75_v8  ;;  %v185_v11 = vmul.f32 0.03125, %v181_v9  ;;  %v277_v9 = vld [vmem:[#allocation7 + $0x28] sm:$0xff] }
  0xc8   :  { %v82_v12 = vsub.f32 %v70_v0, %v80_v10  ;;  %v187_v13 = vsub.f32 %v177_v1, %v185_v11  ;;  %v991_v1 = vmov 1966171168   ;;  %v274_v10 = vld [vmem:[#allocation7 + $0x10] sm:$0xff]  ;;  %v275_v11 = vld [vmem:[#allocation7 + $0x18] sm:$0xff] }
  0xc9   :  { %v78_v14 = vpop.xlane.xlu0 %77  ;;  %v184_v15 = vpop.xlane.xlu1 %183 }
  0xca   :  { %v81_v16 = vmul.f32 0.03125, %v78_v14  ;;  %v186_v17 = vmul.f32 0.03125, %v184_v15  ;;  %v84_v18 = vmul.f32 %v82_v12, %v82_v12  ;;  %v189_v19 = vmul.f32 %v187_v13, %v187_v13  ;;  %v278_v15 = vld [vmem:[#allocation7 + $0x30] sm:$0xff] }
  0xcb   :  { %v829_v14 = vpack.c.bf16 %v277_v9, %v276_v6 }
  0xcc   :  { %v83_v20 = vsub.f32 %v71_v2, %v81_v16  ;;  %v1092_v21 = vsub.f32 %v178_v5, %v186_v17  ;;  %v86_v22 = vsel %vm72_vm0, %v84_v18, 0.0  ;;  %v191_v23 = vsel %vm72_vm0, %v189_v19, 0.0  ;;  %v273_v5 = vld [vmem:[#allocation7 + $0x8] sm:$0xff]  ;;  %v279_v16 = vld [vmem:[#allocation7 + $0x38] sm:$0xff] }
  0xcd   :  { %87 = vadd.xlane.f32.xlu0 %v86_v22  ;;  %v360_v2 = vunpack.c.l.s4 %v991_v1  ;;  %v835_v8 = vpack.c.bf16 %v273_v5, %v272_v4  ;;  %v994_v17 = vmov 0.0   ;;  %v838_v18 = vpack.c.bf16 %v275_v11, %v274_v10  ;;  %830 = vmatpush3.bf16.msra.mxu0 %v829_v14 }
  0xce   :  { %v85_v24 = vmul.f32 %v83_v20, %v83_v20  ;;  %v190_v25 = vmul.f32 %v1092_v21, %v1092_v21  ;;  %781 = vmatprep.mubr.msk.f32.mxu0 %vm993_vm1, %v994_v17  ;;  %792 = vmatprep.mubr.msk.f32.mxu1 %vm993_vm1, %v994_v17  ;;  %v832_v19 = vpack.c.bf16 %v279_v16, %v278_v15 }
  0xcf   :  { %836 = vmatpush3.bf16.msra.mxu1 %v835_v8  ;;  %831 = vmatprep.subr.bf16.mxu0 %v992_v7  ;;  %v358_v22 = vcombine.low %v1106_v40, %v1112_v43 }
  0xd0   :  { %v89_v26 = vsel %vm72_vm0, %v85_v24, 0.0  ;;  %v194_v27 = vsel %vm72_vm0, %v190_v25, 0.0  ;;  %837 = vmatprep.subr.bf16.mxu1 %v992_v7  ;;  %v527_v25 = vld [vmem:[#allocation7 + $0x60] sm:$0xff] }
  0xd1   :  { %192 = vadd.xlane.f32.xlu0 %v191_v23  ;;  %90 = vadd.xlane.f32.xlu1 %v89_v26  ;;  %v528_v26 = vld [vmem:[#allocation7 + $0x68] sm:$0xff] }
  0xd2   :  { %833 = vmatpush3.bf16.msra.mxu0 %v832_v19 }
  0xd3   :  { %839 = vmatpush3.bf16.msra.mxu1 %v838_v18  ;;  %840 = vmatprep.subr.bf16.mxu0 %v992_v7 }
  0xd4   :  { %846 = vmatprep.subr.bf16.mxu1 %v992_v7 }
  0xd5   :  { %195 = vadd.xlane.f32.xlu1 %v194_v27 }
 0x15a   :  { %v88_v28 = vpop.xlane.xlu0 %87 }
 0x15b   :  { %v92_v29 = vmul.f32 0.03125, %v88_v28  ;;  %v847_v28 = vpack.c.bf16 %v528_v26, %v527_v25 }
 0x15d   :  { %v94_v31 = vadd.f32 1e-05, %v92_v29  ;;  %v529_v29 = vld [vmem:[#allocation7 + $0x70] sm:$0xff] }
 0x15e   :  { %v91_v32 = vpop.xlane.xlu1 %90  ;;  %v193_v33 = vpop.xlane.xlu0 %192 }
 0x15f   :  { %868 = vrsqrt.f32 %v94_v31  ;;  %v93_v34 = vmul.f32 0.03125, %v91_v32  ;;  %v197_v35 = vmul.f32 0.03125, %v193_v33  ;;  %v850_v31 = vpack.c.bf16 %v530_v30, %v529_v29  ;;  %v448_v29 = vld [vmem:[#allocation7 + $0x58] sm:$0xff] }
 0x160   :  { %v230_v32 = vrot.slane %v219_v59, %v136_v56 }
 0x161   :  { %v95_v37 = vadd.f32 1e-05, %v93_v34  ;;  %v199_v38 = vadd.f32 1e-05, %v197_v35 }
 0x162   :  { %v196_v62 = vpop.xlane.xlu1 %195 }
 0x163   :  { %870 = vrsqrt.f32 %v95_v37  ;;  %v198_v63 = vmul.f32 0.03125, %v196_v62 }
 0x164   :  { %872 = vrsqrt.f32 %v199_v38 }
 0x165   :  { %v200_v0 = vadd.f32 1e-05, %v198_v63 }
 0x167   :  { %874 = vrsqrt.f32 %v200_v0 }
 0x169   :  { %v869_v42 = vpop.eup %868 }
 0x16a   :  { %v1114_v44 = vmul.f32 %v869_v42, %v82_v12  ;;  %v361_v12 = vunpack.c.0.s8 %v360_v2 }
 0x16c   :  { %v112_v45 = vmul.f32 %v105_v41, %v1114_v44 }
 0x16d   :  { %v871_v47 = vpop.eup %870 }
 0x16e   :  { %v873_v48 = vpop.eup %872  ;;  %v114_v49 = vsel %vm72_vm0, %v112_v45, 0.0  ;;  %v1119_v50 = vmul.f32 %v871_v47, %v83_v20  ;;  %v1148_v20 = vsub.s32 %v361_v12, %v1100_v36 }
 0x16f   :  { %115 = vadd.xlane.f32.xlu0 %v114_v49  ;;  %v1121_v51 = vmul.f32 %v873_v48, %v187_v13 }
 0x170   :  { %v113_v52 = vmul.f32 %v109_v46, %v1119_v50  ;;  %v365_v24 = vrot.slane %v358_v22, %v1148_v20  ;;  %v446_v22 = vld [vmem:[#allocation7 + $0x48] sm:$0xff] }
 0x171   :  { %v205_v53 = vmul.f32 %v1121_v51, %v105_v41  ;;  %v875_v3 = vpop.eup %874 }
 0x172   :  { %v117_v54 = vsel %vm72_vm0, %v113_v52, 0.0  ;;  %v1139_v13 = vmul.f32 %v875_v3, %v1092_v21  ;;  %v372_v27 = vrot.slane %v365_v24, %v1148_v20 }
 0x173   :  { %118 = vadd.xlane.f32.xlu1 %v117_v54  ;;  %v207_v55 = vsel %vm72_vm0, %v205_v53, 0.0 }
 0x174   :  { %208 = vadd.xlane.f32.xlu0 %v207_v55  ;;  %v206_v21 = vmul.f32 %v1139_v13, %v109_v46  ;;  %793 = vmatmul.mubr.msk.f32.vlgmr.msra.gmra.mrb[0].mxu1 %vm72_vm0, %v372_v27 }
 0x175   :  { %848 = vmatpush3.bf16.msra.mxu1 %v847_v28  ;;  %814 = vmatprep.mubr.msk.f32.mxu1 %vm993_vm1, %v994_v17  ;;  %v447_v28 = vld [vmem:[#allocation7 + $0x50] sm:$0xff] }
 0x176   :  { %v210_v23 = vsel %vm72_vm0, %v206_v21, 0.0  ;;  %849 = vmatprep.subr.bf16.mxu1 %v992_v7  ;;  %v445_v21 = vld [vmem:[#allocation7 + $0x40] sm:$0xff] }
 0x177   :  { %v841_v27 = vpack.c.bf16 %v446_v22, %v445_v21 }
 0x179   :  { %851 = vmatpush3.bf16.msra.mxu1 %v850_v31 }
 0x184   :  { %139 = vbcast.lane.b32.xlu1 %v137_v58, 256 }
 0x188   :  { %225 = vbcast.lane.b32.xlu1 %v223_v60, 256 }
 0x18a   :  { %132 = vbcast.lane.b32.xlu0 %v130_v61, 256 }
 0x1ac   :  { %211 = vadd.xlane.f32.xlu1 %v210_v23 }
 0x1bd   :  { %232 = vbcast.lane.b32.xlu1 %v230_v32, 256 }
 0x1fc   :  { %v116_v33 = vpop.xlane.xlu0 %115 }
 0x1fd   :  { %v120_v34 = vmul.f32 0.17677669, %v116_v33 }
 0x1ff   :  { %v122_v35 = vmul.f32 1.442695, %v120_v34  ;;  %v844_v34 = vpack.c.bf16 %v448_v29, %v447_v28 }
 0x200   :  { %v119_v37 = vpop.xlane.xlu1 %118 }
 0x201   :  { %876 = vpow2.f32 %v122_v35  ;;  %v121_v38 = vmul.f32 0.17677669, %v119_v37  ;;  %v209_v41 = vpop.xlane.xlu0 %208 }
 0x202   :  { %v213_v11 = vmul.f32 0.17677669, %v209_v41 }
 0x203   :  { %v124_v39 = vmul.f32 1.442695, %v121_v38 }
 0x204   :  { %v140_v52 = vpop.permute.xlu1 %139  ;;  %v215_v15 = vmul.f32 1.442695, %v213_v11 }
 0x205   :  { %878 = vpow2.f32 %v124_v39  ;;  %v133_v42 = vpop.permute.xlu0 %132 }
 0x208   :  { %v226_v39 = vpop.permute.xlu1 %225 }
 0x20b   :  { %v877_v45 = vpop.eup %876 }
 0x20c   :  { %v141_v46 = vmul.f32 %v877_v45, %v133_v42 }
 0x20e   :  { %v143_v47 = vrot.slane %v141_v46, 4  ;;  %v157_v48 = vmul.f32 %v141_v46, %v1114_v44 }
 0x20f   :  { %v879_v49 = vpop.eup %878 }
 0x210   :  { %v142_v36 = vmul.f32 %v879_v49, %v140_v52  ;;  %v144_v53 = vadd.f32 %v143_v47, %v141_v46  ;;  %v159_v54 = vsel %vm72_vm0, %v157_v48, 0.0 }
 0x211   :  { %v160_v58 = vrot.slane %v159_v54, 4 }
 0x212   :  { %v149_v55 = vrot.slane %v142_v36, 4  ;;  %v158_v56 = vmul.f32 %v142_v36, %v1119_v50  ;;  %v145_v57 = vrot.slane %v144_v53, 2 }
 0x213   :  { %v161_v1 = vadd.f32 %v160_v58, %v159_v54 }
 0x214   :  { %v150_v59 = vadd.f32 %v149_v55, %v142_v36  ;;  %v166_v60 = vsel %vm72_vm0, %v158_v56, 0.0  ;;  %v146_v61 = vadd.f32 %v145_v57, %v144_v53 }
 0x215   :  { %v167_v62 = vrot.slane %v166_v60, 4  ;;  %v162_v6 = vrot.slane %v161_v1, 2 }
 0x216   :  { %v151_v63 = vrot.slane %v150_v59, 2  ;;  %v147_v0 = vrot.slane %v146_v61, 1 }
 0x217   :  { %v168_v3 = vadd.f32 %v167_v62, %v166_v60  ;;  %v163_v10 = vadd.f32 %v162_v6, %v161_v1 }
 0x218   :  { %v152_v44 = vadd.f32 %v151_v63, %v150_v59  ;;  %v148_v2 = vadd.f32 %v147_v0, %v146_v61 }
 0x219   :  { %v169_v9 = vrot.slane %v168_v3, 2  ;;  %v164_v14 = vrot.slane %v163_v10, 1 }
 0x21a   :  { %v153_v4 = vrot.slane %v152_v44, 1  ;;  %v155_v5 = vadd.f32 1e-15, %v148_v2 }
 0x21b   :  { %v170_v12 = vadd.f32 %v169_v9, %v168_v3  ;;  %v165_v19 = vadd.f32 %v164_v14, %v163_v10 }
 0x21c   :  { %v154_v8 = vadd.f32 %v153_v4, %v152_v44  ;;  %880 = vrcp.f32 %v155_v5 }
 0x21d   :  { %v171_v16 = vrot.slane %v170_v12, 1 }
 0x21e   :  { %v156_v50 = vadd.f32 1e-15, %v154_v8 }
 0x21f   :  { %v172_v23 = vadd.f32 %v171_v16, %v170_v12  ;;  %v624_v16 = vld [vmem:[#allocation7 + $0x88] sm:$0xff] }
 0x220   :  { %882 = vrcp.f32 %v156_v50 }
 0x221   :  { %884 = vpow2.f32 %v215_v15  ;;  %v623_v15 = vld [vmem:[#allocation7 + $0x80] sm:$0xff] }
 0x226   :  { %v881_v18 = vpop.eup %880 }
 0x227   :  { %v174_v24 = vmul.f32 %v881_v18, %v165_v19 }
 0x229   :  { %v525_v31 = vmul.f32 %v174_v24, %v1106_v40 }
 0x22a   :  { %v883_v25 = vpop.eup %882 }
 0x22b   :  { %v176_v26 = vmul.f32 %v883_v25, %v172_v23  ;;  %v885_v37 = vpop.eup %884  ;;  %v853_v23 = vpack.c.bf16 %v624_v16, %v623_v15  ;;  %v626_v25 = vld [vmem:[#allocation7 + $0x98] sm:$0xff] }
 0x22c   :  { %v234_v41 = vmul.f32 %v885_v37, %v226_v39 }
 0x22d   :  { %v283_v30 = vsel %vm282_vm2, %v176_v26, %v174_v24  ;;  %v526_v32 = vmul.f32 %v176_v26, %v1112_v43  ;;  %v625_v24 = vld [vmem:[#allocation7 + $0x90] sm:$0xff] }
 0x22e   :  { %782 = vmatmul.mubr.msk.f32.vlgmr.msra.gmra.mrb[0].mxu0 %vm72_vm0, %v283_v30  ;;  %v236_v42 = vrot.slane %v234_v41, 4  ;;  %v250_v36 = vmul.f32 %v234_v41, %v1121_v51  ;;  %v856_v30 = vpack.c.bf16 %v626_v25, %v625_v24 }
 0x22f   :  { %v533_v33 = vcombine.low %v525_v31, %v526_v32  ;;  %842 = vmatpush3.bf16.msra.mxu0 %v841_v27  ;;  %803 = vmatprep.mubr.msk.f32.mxu0 %vm993_vm1, %v994_v17 }
 0x230   :  { %843 = vmatprep.subr.bf16.mxu0 %v992_v7  ;;  %v237_v48 = vadd.f32 %v236_v42, %v234_v41  ;;  %v252_v56 = vsel %vm72_vm0, %v250_v36, 0.0 }
 0x231   :  { %v540_v35 = vrot.slane %v533_v33, %v1148_v20  ;;  %v253_v60 = vrot.slane %v252_v56, 4 }
 0x232   :  { %v238_v49 = vrot.slane %v237_v48, 2 }
 0x233   :  { %v547_v38 = vrot.slane %v540_v35, %v1148_v20  ;;  %845 = vmatpush3.bf16.msra.mxu0 %v844_v34  ;;  %v254_v44 = vadd.f32 %v253_v60, %v252_v56 }
 0x234   :  { %852 = vmatprep.subr.bf16.mxu0 %v992_v7  ;;  %v239_v52 = vadd.f32 %v238_v49, %v237_v48 }
 0x235   :  { %815 = vmatmul.mubr.msk.f32.vlgmr.msra.gmra.mrb[2].mxu1 %vm72_vm0, %v547_v38  ;;  %v255_v5 = vrot.slane %v254_v44, 2 }
 0x236   :  { %v240_v55 = vrot.slane %v239_v52, 1 }
 0x237   :  { %v256_v50 = vadd.f32 %v255_v5, %v254_v44 }
 0x238   :  { %v241_v61 = vadd.f32 %v240_v55, %v239_v52 }
 0x239   :  { %v212_v45 = vpop.xlane.xlu1 %211  ;;  %v257_v10 = vrot.slane %v256_v50, 1 }
 0x23a   :  { %v214_v46 = vmul.f32 0.17677669, %v212_v45  ;;  %v248_v2 = vadd.f32 1e-15, %v241_v61 }
 0x23b   :  { %v258_v14 = vadd.f32 %v257_v10, %v256_v50 }
 0x23c   :  { %v217_v47 = vmul.f32 1.442695, %v214_v46 }
 0x23d   :  { %v233_v53 = vpop.permute.xlu1 %232 }
 0x23e   :  { %886 = vpow2.f32 %v217_v47 }
 0x23f   :  { %888 = vrcp.f32 %v248_v2 }
 0x248   :  { %v887_v54 = vpop.eup %886 }
 0x249   :  { %v235_v57 = vmul.f32 %v887_v54, %v233_v53  ;;  %v889_v12 = vpop.eup %888 }
 0x24a   :  { %v267_v19 = vmul.f32 %v889_v12, %v258_v14 }
 0x24b   :  { %v242_v58 = vrot.slane %v235_v57, 4  ;;  %v251_v59 = vmul.f32 %v235_v57, %v1139_v13 }
 0x24c   :  { %v621_v27 = vmul.f32 %v267_v19, %v1106_v40  ;;  %v441_v40 = vpop.f32.mrb[0].mxu1 }
 0x24d   :  { %v243_v62 = vadd.f32 %v242_v58, %v235_v57  ;;  %v259_v63 = vsel %vm72_vm0, %v251_v59, 0.0  ;;  %v794_v33 = vpop.f32.mrb[1].mxu1 }
 0x24e   :  { %v260_v0 = vrot.slane %v259_v63, 4 }
 0x24f   :  { %v244_v1 = vrot.slane %v243_v62, 2 }
 0x250   :  { %v261_v51 = vadd.f32 %v260_v0, %v259_v63 }
 0x251   :  { %v245_v3 = vadd.f32 %v244_v1, %v243_v62 }
 0x252   :  { %v262_v8 = vrot.slane %v261_v51, 2 }
 0x253   :  { %v246_v4 = vrot.slane %v245_v3, 1 }
 0x254   :  { %v263_v13 = vadd.f32 %v262_v8, %v261_v51 }
 0x255   :  { %v247_v6 = vadd.f32 %v246_v4, %v245_v3 }
 0x256   :  { %v264_v11 = vrot.slane %v263_v13, 1 }
 0x257   :  { %v249_v9 = vadd.f32 1e-15, %v247_v6 }
 0x258   :  { %v265_v18 = vadd.f32 %v264_v11, %v263_v13 }
 0x259   :  { %890 = vrcp.f32 %v249_v9 }
 0x263   :  { %v891_v21 = vpop.eup %890 }
 0x264   :  { %v269_v22 = vmul.f32 %v891_v21, %v265_v18 }
 0x266   :  { %v451_v26 = vsel %vm282_vm2, %v269_v22, %v267_v19  ;;  %v622_v28 = vmul.f32 %v269_v22, %v1112_v43 }
 0x267   :  { %804 = vmatmul.mubr.msk.f32.vlgmr.msra.gmra.mrb[2].mxu0 %vm72_vm0, %v451_v26 }
 0x268   :  { %v629_v29 = vcombine.low %v621_v27, %v622_v28  ;;  %854 = vmatpush3.bf16.msra.mxu0 %v853_v23  ;;  %825 = vmatprep.mubr.msk.f32.mxu0 %vm993_vm1, %v994_v17 }
 0x269   :  { %855 = vmatprep.subr.bf16.mxu0 %v992_v7  ;;  %v747_v7 = vld [vmem:[%s1214_s6] ss:$0 sm:$0xff] }
 0x26a   :  { %v636_v31 = vrot.slane %v629_v29, %v1148_v20 }
 0x26c   :  { %857 = vmatpush3.bf16.msra.mxu0 %v856_v30  ;;  %v643_v32 = vrot.slane %v636_v31, %v1148_v20 }
 0x26f   :  { %826 = vmatmul.mubr.msk.f32.vlgmr.msra.gmra.mrb[4].mxu0 %vm72_vm0, %v643_v32 }
 0x301   :  { %v352_v43 = vpop.f32.mrb[0].mxu0 }
 0x302   :  { %v442_v34 = vadd.f32 %v441_v40, %v352_v43  ;;  %v783_v35 = vpop.f32.mrb[1].mxu0 }
 0x308   :  { %v616_v37 = vpop.f32.mrb[2].mxu1 }
 0x309   :  { %v816_v38 = vpop.f32.mrb[3].mxu1 }
 0x33a   :  { %v520_v39 = vpop.f32.mrb[2].mxu0 }
 0x33b   :  { %v524_v41 = vadd.f32 %v520_v39, %v442_v34  ;;  %v805_v42 = vpop.f32.mrb[3].mxu0 }
 0x33d   :  { %v620_v17 = vadd.f32 %v616_v37, %v524_v41 }
 0x342   :  { %v712_v45 = vpop.f32.mrb[4].mxu0 }
 0x343   :  { %v716_v20 = vadd.f32 %v712_v45, %v620_v17  ;;  %v827_v46 = vpop.f32.mrb[5].mxu0 }
 0x345   :  { %v724_v47 = vadd.f32 %v747_v7, %v716_v20 }
 0x347   :  { %725 = vst [vmem:[#allocation8] sm:$0x3] %v724_v47 }
 0x348   :  { %969 = shalt.err (!%p966_p0)
}
 0x349   :  { %s970_s2 = scalar_lea.hbm %s1215_s7, 32 }
 0x34a   :  { %p971_p1 = scmp.ne.s32.totalorder %s1215_s7, %s970_s2  ;;  %p974_p2 = scmp.lt.u32.totalorder %s970_s2, %s1215_s7 }
 0x34c   :  { %p976_p3 = pnand %p974_p2, %p971_p1 }
 0x34e   :  { %979 = shalt.err (!%p976_p3)
}
 0x34f   :  { %735 = dma.vmem_to_hbm [thread:$0]  %s733_s21, 32, %s1215_s7, [#allocation4]  }
 0x350   :  { %984 = dma.done.wait [#allocation4], 32  }
 0x351   :  { %985 = vsyncadd [#allocation4], 4294967264 }
 0x352   :  { %739 = vsyncpa [#allocation3], 1 }
 0x353   :  { %740 = vsyncpa [#allocation6], 1 }
 0x354   :  { %741 = vsyncpa [#allocation4], 1 }

</bundles_post_ra>
